<compile_context>
chip_gen: v7x
topology: tpu7x:2x2x1
jax: 0.10.0
libtpu: 0.0.40
codegen_flags: <defaults>
</compile_context>

<pallas_src>
import functools

import jax
import jax.numpy as jnp
from jax import lax
from jax.experimental import pallas as pl
from jax.experimental.pallas import tpu as pltpu

NEG_SLOPE = 0.01   # nn.LeakyReLU() default
BN_EPS = 1e-5      # nn.BatchNorm2d default


def _leaky(x):
    return jnp.where(x > 0, x, NEG_SLOPE * x)


def basic_block_kernel(x_ref, mask_ref, w1_ref, w2_ref, b1_ref, b2_ref,
                       o_ref, col_ref, *, W, nb, mxu_dtype):
    """One grid step processes `nb` images.

    x_ref   : (nb, C, HWp) f32   flattened activations (lane axis = H*W, padded)
    mask_ref: (9, HWp)     f32   per-tap border masks (1 inside image, 0 outside)
    w1_ref  : (C, 9*C)     mxu   conv1 weights with BN1 scale folded, taps in K
    w2_ref  : (C, 9*C)     mxu   conv2 weights with BN2 scale folded
    b1_ref  : (C, 1)       f32   folded BN1 shift
    b2_ref  : (C, 1)       f32   folded BN2 shift
    o_ref   : (nb, C, HWp) f32
    col_ref : (9*C, HWp)   f32   im2col scratch (fully rewritten before each read)
    """
    HWp = x_ref.shape[-1]
    C = x_ref.shape[1]

    w1 = w1_ref[...]
    w2 = w2_ref[...]
    b1 = b1_ref[...]
    b2 = b2_ref[...]

    def im2col(a):
        # a: (C, HWp) f32, lane-dense. Tap (dh, dw) needs a[h+dh, w+dw], which
        # at flat position p = h*W + w is a circular lane rotation by
        # -(dh*W + dw); wrapped / out-of-image positions are zeroed by the
        # precomputed mask (this also implements the conv's zero padding).
        t = 0
        for dh in (-1, 0, 1):
            for dw in (-1, 0, 1):
                shift = (-(dh * W + dw)) % HWp
                a_s = a if shift == 0 else pltpu.roll(a, shift=shift, axis=1)
                col_ref[t * C:(t + 1) * C, :] = a_s * mask_ref[t:t + 1, :]
                t += 1
        return col_ref[...].astype(mxu_dtype)

    for b in range(nb):                    # static unroll over the batch block
        x = x_ref[b]                       # (C, HWp) f32
        # conv1 (BN1 scale folded into w1) -> BN1 shift -> LeakyReLU
        y = jnp.dot(w1, im2col(x), preferred_element_type=jnp.float32)
        y = _leaky(y + b1)
        # conv2 (BN2 scale folded into w2) -> BN2 shift -> +skip -> LeakyReLU
        z = jnp.dot(w2, im2col(y), preferred_element_type=jnp.float32)
        z = _leaky(z + b2 + x)
        o_ref[b] = z.astype(o_ref.dtype)


def basic_block(x_nchw, w1_hwio, w2_hwio, bn1, bn2, *,
                batch_block=1, mxu_dtype=jnp.bfloat16):
    """BasicBlock forward (default path: skip = x, stride = 1).

    x_nchw : (N, C, H, W) f32
    w*_hwio: (3, 3, C, C) conv weights, HWIO layout
    bn*    : (gamma, beta, running_mean, running_var), each (C,)
    Returns (N, C, H, W) f32.
    """
    N, C, H, W = x_nchw.shape
    Cout = w1_hwio.shape[-1]
    assert C == Cout == w2_hwio.shape[-1], \
        "default skip path requires in_channel == out_channel (stride=1)"
    assert N % batch_block == 0
    HW = H * W
    HWp = ((HW + 127) // 128) * 128            # lane-align flattened spatial dim

    xf = x_nchw.astype(jnp.float32).reshape(N, C, HW)
    if HWp != HW:
        xf = jnp.pad(xf, ((0, 0), (0, 0), (0, HWp - HW)))

    def fold(w_hwio, bn):
        # BN (inference):  bn(conv(x, w)) = conv(x, w) * scale + shift
        #                                 = conv(x, w * scale) + shift,
        # since scale is per-output-channel (commutes with the conv).
        gamma, beta, mean, var = bn
        scale = (gamma / jnp.sqrt(var + BN_EPS)).astype(jnp.float32)
        shift = (beta - mean * scale).astype(jnp.float32).reshape(Cout, 1)
        cin = w_hwio.shape[2]
        wt = w_hwio.astype(jnp.float32) * scale[None, None, None, :]
        # (3,3,Cin,Cout) -> (9*Cin, Cout) -> (Cout, 9*Cin); row order matches the
        # kernel's tap order (dh, dw, ci).
        wt = wt.reshape(9 * cin, Cout).T.astype(mxu_dtype)
        return wt, shift

    w1t, b1 = fold(w1_hwio, bn1)
    w2t, b2 = fold(w2_hwio, bn2)

    # Per-tap validity masks over the flattened (lane-padded) spatial axis.
    p = jnp.arange(HWp, dtype=jnp.int32)
    hh, ww = p // W, p % W
    rows = []
    for dh in (-1, 0, 1):
        for dw in (-1, 0, 1):
            ok = ((hh + dh >= 0) & (hh + dh < H) &
                  (ww + dw >= 0) & (ww + dw < W) & (p < HW))
            rows.append(ok)
    mask = jnp.stack(rows, axis=0).astype(jnp.float32)           # (9, HWp)

    nb = batch_block
    kernel = functools.partial(basic_block_kernel, W=W, nb=nb, mxu_dtype=mxu_dtype)

    out = pl.pallas_call(
        kernel,
        out_shape=jax.ShapeDtypeStruct((N, Cout, HWp), jnp.float32),
        grid_spec=pltpu.PrefetchScalarGridSpec(
            num_scalar_prefetch=0,
            grid=(N // nb,),
            in_specs=[
                pl.BlockSpec((nb, C, HWp), lambda g: (g, 0, 0)),
                pl.BlockSpec((9, HWp), lambda g: (0, 0)),
                pl.BlockSpec((Cout, 9 * C), lambda g: (0, 0)),
                pl.BlockSpec((Cout, 9 * Cout), lambda g: (0, 0)),
                pl.BlockSpec((Cout, 1), lambda g: (0, 0)),
                pl.BlockSpec((Cout, 1), lambda g: (0, 0)),
            ],
            out_specs=pl.BlockSpec((nb, Cout, HWp), lambda g: (g, 0, 0)),
            scratch_shapes=[pltpu.VMEM((9 * Cout, HWp), jnp.float32)],
        ),
        compiler_params=pltpu.CompilerParams(
            dimension_semantics=("parallel",)),
    )(xf, mask, w1t, w2t, b1, b2)

    return out[:, :, :HW].reshape(N, Cout, H, W)


def reference_basic_block(x_nchw, w1_hwio, w2_hwio, bn1, bn2):
    """Pure-JAX f32 reference (lax.conv at highest precision)."""
    dn = ("NCHW", "HWIO", "NCHW")

    def conv(x, w):
        return lax.conv_general_dilated(x, w, window_strides=(1, 1),
                                        padding=((1, 1), (1, 1)),
                                        dimension_numbers=dn,
                                        precision=lax.Precision.HIGHEST)

    def bn(x, params):
        gamma, beta, mean, var = (q.reshape(1, -1, 1, 1) for q in params)
        return (x - mean) / jnp.sqrt(var + BN_EPS) * gamma + beta

    skip = x_nchw
    out = _leaky(bn(conv(x_nchw, w1_hwio), bn1))
    out = bn(conv(out, w2_hwio), bn2)
    return _leaky(out + skip)


if __name__ == "__main__":
    key = jax.random.PRNGKey(0)
    N, C, H, W = 2, 4, 16, 16                 # in_channel == out_channel, stride=1

    k_x, k_w1, k_w2, k_bn = jax.random.split(key, 4)
    x = jax.random.normal(k_x, (N, C, H, W), dtype=jnp.float32)

    fan_in = C * 3 * 3
    w1 = jax.random.normal(k_w1, (3, 3, C, C), dtype=jnp.float32) / jnp.sqrt(fan_in)
    w2 = jax.random.normal(k_w2, (3, 3, C, C), dtype=jnp.float32) / jnp.sqrt(fan_in)

    # Non-trivial (but unit-scale) BN parameters so the BN folding is exercised.
    def mk_bn(k):
        g = 1.0 + 0.1 * jax.random.normal(jax.random.fold_in(k, 0), (C,))
        b = 0.1 * jax.random.normal(jax.random.fold_in(k, 1), (C,))
        m = 0.1 * jax.random.normal(jax.random.fold_in(k, 2), (C,))
        v = 1.0 + 0.1 * jnp.abs(jax.random.normal(jax.random.fold_in(k, 3), (C,)))
        return g, b, m, v

    kb1, kb2 = jax.random.split(k_bn, 2)
    bn1 = mk_bn(kb1)
    bn2 = mk_bn(kb2)

    out = jax.block_until_ready(basic_block(x, w1, w2, bn1, bn2))
    ref = jax.block_until_ready(reference_basic_block(x, w1, w2, bn1, bn2))

    assert out.shape == (N, C, H, W)
    # bf16 MXU operands vs f32 reference: quantization error is O(1e-2) on these
    # unit-scale activations; a layout/tap bug would produce O(1) errors.
    err = float(jnp.max(jnp.abs(out - ref)))
    assert err < 8e-2, f"mismatch vs JAX reference: max abs err = {err}"

    print("KERNEL_OK")
</pallas_src>

<mosaic_0001>
module attributes {stable_mosaic.version = 11 : i64} {
  func.func @basic_block_kernel(%arg0: i32, %arg1: memref<1x4x256xf32, #tpu.memory_space<vmem>>, %arg2: memref<9x256xf32, #tpu.memory_space<vmem>>, %arg3: memref<4x36xbf16, #tpu.memory_space<vmem>>, %arg4: memref<4x36xbf16, #tpu.memory_space<vmem>>, %arg5: memref<4x1xf32, #tpu.memory_space<vmem>>, %arg6: memref<4x1xf32, #tpu.memory_space<vmem>>, %arg7: memref<1x4x256xf32, #tpu.memory_space<vmem>>, %arg8: memref<36x256xf32, #tpu.memory_space<vmem>>) attributes {dimension_semantics = [#tpu.dimension_semantics<parallel>], iteration_bounds = array<i64: 2>, scalar_prefetch = 0 : i64, scratch_operands = 1 : i64, tpu.core_type = #tpu.core_type<tc>, window_params = [{transform_indices = @transform_0, window_bounds = array<i64: 1, 4, 256>}, {pipeline_mode = #tpu.pipeline_mode<synchronous>, transform_indices = @transform_1, window_bounds = array<i64: 9, 256>}, {pipeline_mode = #tpu.pipeline_mode<synchronous>, transform_indices = @transform_2, window_bounds = array<i64: 4, 36>}, {pipeline_mode = #tpu.pipeline_mode<synchronous>, transform_indices = @transform_3, window_bounds = array<i64: 4, 36>}, {pipeline_mode = #tpu.pipeline_mode<synchronous>, transform_indices = @transform_4, window_bounds = array<i64: 4, 1>}, {pipeline_mode = #tpu.pipeline_mode<synchronous>, transform_indices = @transform_5, window_bounds = array<i64: 4, 1>}, {transform_indices = @transform_6, window_bounds = array<i64: 1, 4, 256>}]} {
    %c0 = arith.constant 0 : index
    %c0_0 = arith.constant 0 : index
    %0 = vector.load %arg3[%c0, %c0_0] : memref<4x36xbf16, #tpu.memory_space<vmem>>, vector<4x36xbf16>
    %c0_1 = arith.constant 0 : index
    %c0_2 = arith.constant 0 : index
    %1 = vector.load %arg4[%c0_1, %c0_2] : memref<4x36xbf16, #tpu.memory_space<vmem>>, vector<4x36xbf16>
    %c0_3 = arith.constant 0 : index
    %c0_4 = arith.constant 0 : index
    %2 = vector.load %arg5[%c0_3, %c0_4] : memref<4x1xf32, #tpu.memory_space<vmem>>, vector<4x1xf32>
    %c0_5 = arith.constant 0 : index
    %c0_6 = arith.constant 0 : index
    %3 = vector.load %arg6[%c0_5, %c0_6] : memref<4x1xf32, #tpu.memory_space<vmem>>, vector<4x1xf32>
    %c0_7 = arith.constant 0 : index
    %c0_8 = arith.constant 0 : index
    %c0_9 = arith.constant 0 : index
    %4 = vector.load %arg1[%c0_7, %c0_8, %c0_9] : memref<1x4x256xf32, #tpu.memory_space<vmem>>, vector<1x4x256xf32>
    %5 = vector.shape_cast %4 : vector<1x4x256xf32> to vector<4x256xf32>
    %c17_i32 = arith.constant 17 : i32
    %6 = tpu.dynamic_rotate %5 by %c17_i32 dim 1 : vector<4x256xf32>, i32 -> vector<4x256xf32>
    %c0_10 = arith.constant 0 : index
    %c0_11 = arith.constant 0 : index
    %7 = vector.load %arg2[%c0_10, %c0_11] : memref<9x256xf32, #tpu.memory_space<vmem>>, vector<1x256xf32>
    %8 = vector.broadcast %7 : vector<1x256xf32> to vector<4x256xf32>
    %9 = arith.mulf %6, %8 : vector<4x256xf32>
    %c0_12 = arith.constant 0 : index
    %c0_13 = arith.constant 0 : index
    %10 = vector.load %arg8[%c0_12, %c0_13] : memref<36x256xf32, #tpu.memory_space<vmem>>, vector<4x256xf32>
    tpu.vector_store %arg8[%c0_12, %c0_13], %9 {strides = array<i32>} : memref<36x256xf32, #tpu.memory_space<vmem>>, vector<4x256xf32>,
    %c16_i32 = arith.constant 16 : i32
    %11 = tpu.dynamic_rotate %5 by %c16_i32 dim 1 : vector<4x256xf32>, i32 -> vector<4x256xf32>
    %c1 = arith.constant 1 : index
    %c0_14 = arith.constant 0 : index
    %12 = vector.load %arg2[%c1, %c0_14] : memref<9x256xf32, #tpu.memory_space<vmem>>, vector<1x256xf32>
    %13 = vector.broadcast %12 : vector<1x256xf32> to vector<4x256xf32>
    %14 = arith.mulf %11, %13 : vector<4x256xf32>
    %c4 = arith.constant 4 : index
    %c0_15 = arith.constant 0 : index
    %15 = vector.load %arg8[%c4, %c0_15] : memref<36x256xf32, #tpu.memory_space<vmem>>, vector<4x256xf32>
    tpu.vector_store %arg8[%c4, %c0_15], %14 {strides = array<i32>} : memref<36x256xf32, #tpu.memory_space<vmem>>, vector<4x256xf32>,
    %c15_i32 = arith.constant 15 : i32
    %16 = tpu.dynamic_rotate %5 by %c15_i32 dim 1 : vector<4x256xf32>, i32 -> vector<4x256xf32>
    %c2 = arith.constant 2 : index
    %c0_16 = arith.constant 0 : index
    %17 = vector.load %arg2[%c2, %c0_16] : memref<9x256xf32, #tpu.memory_space<vmem>>, vector<1x256xf32>
    %18 = vector.broadcast %17 : vector<1x256xf32> to vector<4x256xf32>
    %19 = arith.mulf %16, %18 : vector<4x256xf32>
    %c8 = arith.constant 8 : index
    %c0_17 = arith.constant 0 : index
    %20 = vector.load %arg8[%c8, %c0_17] : memref<36x256xf32, #tpu.memory_space<vmem>>, vector<4x256xf32>
    tpu.vector_store %arg8[%c8, %c0_17], %19 {strides = array<i32>} : memref<36x256xf32, #tpu.memory_space<vmem>>, vector<4x256xf32>,
    %c1_i32 = arith.constant 1 : i32
    %21 = tpu.dynamic_rotate %5 by %c1_i32 dim 1 : vector<4x256xf32>, i32 -> vector<4x256xf32>
    %c3 = arith.constant 3 : index
    %c0_18 = arith.constant 0 : index
    %22 = vector.load %arg2[%c3, %c0_18] : memref<9x256xf32, #tpu.memory_space<vmem>>, vector<1x256xf32>
    %23 = vector.broadcast %22 : vector<1x256xf32> to vector<4x256xf32>
    %24 = arith.mulf %21, %23 : vector<4x256xf32>
    %c12 = arith.constant 12 : index
    %c0_19 = arith.constant 0 : index
    %25 = vector.load %arg8[%c12, %c0_19] : memref<36x256xf32, #tpu.memory_space<vmem>>, vector<4x256xf32>
    tpu.vector_store %arg8[%c12, %c0_19], %24 {strides = array<i32>} : memref<36x256xf32, #tpu.memory_space<vmem>>, vector<4x256xf32>,
    %c4_20 = arith.constant 4 : index
    %c0_21 = arith.constant 0 : index
    %26 = vector.load %arg2[%c4_20, %c0_21] : memref<9x256xf32, #tpu.memory_space<vmem>>, vector<1x256xf32>
    %27 = vector.broadcast %26 : vector<1x256xf32> to vector<4x256xf32>
    %28 = arith.mulf %5, %27 : vector<4x256xf32>
    %c16 = arith.constant 16 : index
    %c0_22 = arith.constant 0 : index
    %29 = vector.load %arg8[%c16, %c0_22] : memref<36x256xf32, #tpu.memory_space<vmem>>, vector<4x256xf32>
    tpu.vector_store %arg8[%c16, %c0_22], %28 {strides = array<i32>} : memref<36x256xf32, #tpu.memory_space<vmem>>, vector<4x256xf32>,
    %c255_i32 = arith.constant 255 : i32
    %30 = tpu.dynamic_rotate %5 by %c255_i32 dim 1 : vector<4x256xf32>, i32 -> vector<4x256xf32>
    %c5 = arith.constant 5 : index
    %c0_23 = arith.constant 0 : index
    %31 = vector.load %arg2[%c5, %c0_23] : memref<9x256xf32, #tpu.memory_space<vmem>>, vector<1x256xf32>
    %32 = vector.broadcast %31 : vector<1x256xf32> to vector<4x256xf32>
    %33 = arith.mulf %30, %32 : vector<4x256xf32>
    %c20 = arith.constant 20 : index
    %c0_24 = arith.constant 0 : index
    %34 = vector.load %arg8[%c20, %c0_24] : memref<36x256xf32, #tpu.memory_space<vmem>>, vector<4x256xf32>
    tpu.vector_store %arg8[%c20, %c0_24], %33 {strides = array<i32>} : memref<36x256xf32, #tpu.memory_space<vmem>>, vector<4x256xf32>,
    %c241_i32 = arith.constant 241 : i32
    %35 = tpu.dynamic_rotate %5 by %c241_i32 dim 1 : vector<4x256xf32>, i32 -> vector<4x256xf32>
    %c6 = arith.constant 6 : index
    %c0_25 = arith.constant 0 : index
    %36 = vector.load %arg2[%c6, %c0_25] : memref<9x256xf32, #tpu.memory_space<vmem>>, vector<1x256xf32>
    %37 = vector.broadcast %36 : vector<1x256xf32> to vector<4x256xf32>
    %38 = arith.mulf %35, %37 : vector<4x256xf32>
    %c24 = arith.constant 24 : index
    %c0_26 = arith.constant 0 : index
    %39 = vector.load %arg8[%c24, %c0_26] : memref<36x256xf32, #tpu.memory_space<vmem>>, vector<4x256xf32>
    tpu.vector_store %arg8[%c24, %c0_26], %38 {strides = array<i32>} : memref<36x256xf32, #tpu.memory_space<vmem>>, vector<4x256xf32>,
    %c240_i32 = arith.constant 240 : i32
    %40 = tpu.dynamic_rotate %5 by %c240_i32 dim 1 : vector<4x256xf32>, i32 -> vector<4x256xf32>
    %c7 = arith.constant 7 : index
    %c0_27 = arith.constant 0 : index
    %41 = vector.load %arg2[%c7, %c0_27] : memref<9x256xf32, #tpu.memory_space<vmem>>, vector<1x256xf32>
    %42 = vector.broadcast %41 : vector<1x256xf32> to vector<4x256xf32>
    %43 = arith.mulf %40, %42 : vector<4x256xf32>
    %c28 = arith.constant 28 : index
    %c0_28 = arith.constant 0 : index
    %44 = vector.load %arg8[%c28, %c0_28] : memref<36x256xf32, #tpu.memory_space<vmem>>, vector<4x256xf32>
    tpu.vector_store %arg8[%c28, %c0_28], %43 {strides = array<i32>} : memref<36x256xf32, #tpu.memory_space<vmem>>, vector<4x256xf32>,
    %c239_i32 = arith.constant 239 : i32
    %45 = tpu.dynamic_rotate %5 by %c239_i32 dim 1 : vector<4x256xf32>, i32 -> vector<4x256xf32>
    %c8_29 = arith.constant 8 : index
    %c0_30 = arith.constant 0 : index
    %46 = vector.load %arg2[%c8_29, %c0_30] : memref<9x256xf32, #tpu.memory_space<vmem>>, vector<1x256xf32>
    %47 = vector.broadcast %46 : vector<1x256xf32> to vector<4x256xf32>
    %48 = arith.mulf %45, %47 : vector<4x256xf32>
    %c32 = arith.constant 32 : index
    %c0_31 = arith.constant 0 : index
    %49 = vector.load %arg8[%c32, %c0_31] : memref<36x256xf32, #tpu.memory_space<vmem>>, vector<4x256xf32>
    tpu.vector_store %arg8[%c32, %c0_31], %48 {strides = array<i32>} : memref<36x256xf32, #tpu.memory_space<vmem>>, vector<4x256xf32>,
    %c0_32 = arith.constant 0 : index
    %c0_33 = arith.constant 0 : index
    %50 = vector.load %arg8[%c0_32, %c0_33] : memref<36x256xf32, #tpu.memory_space<vmem>>, vector<36x256xf32>
    %51 = arith.truncf %50 : vector<36x256xf32> to vector<36x256xbf16>
    %cst = arith.constant dense<0.000000e+00> : vector<4x256xf32>
    %52 = tpu.matmul %0, %51, %cst {dimension_numbers = #tpu.dot_dimension_numbers<[1], [0], [0], [1], [0, 0, 1, 1], [], []>} : vector<4x36xbf16>, vector<36x256xbf16>, vector<4x256xf32> -> vector<4x256xf32>
    %53 = vector.broadcast %2 : vector<4x1xf32> to vector<4x256xf32>
    %54 = arith.addf %52, %53 : vector<4x256xf32>
    %cst_34 = arith.constant 0.000000e+00 : f32
    %55 = vector.broadcast %cst_34 : f32 to vector<4x256xf32>
    %56 = arith.cmpf ogt, %54, %55 : vector<4x256xf32>
    %cst_35 = arith.constant 0.00999999977 : f32
    %57 = vector.broadcast %cst_35 : f32 to vector<4x256xf32>
    %58 = arith.mulf %57, %54 : vector<4x256xf32>
    %59 = arith.select %56, %54, %58 : vector<4x256xi1>, vector<4x256xf32>
    %c17_i32_36 = arith.constant 17 : i32
    %60 = tpu.dynamic_rotate %59 by %c17_i32_36 dim 1 : vector<4x256xf32>, i32 -> vector<4x256xf32>
    %c0_37 = arith.constant 0 : index
    %c0_38 = arith.constant 0 : index
    %61 = vector.load %arg2[%c0_37, %c0_38] : memref<9x256xf32, #tpu.memory_space<vmem>>, vector<1x256xf32>
    %62 = vector.broadcast %61 : vector<1x256xf32> to vector<4x256xf32>
    %63 = arith.mulf %60, %62 : vector<4x256xf32>
    %c0_39 = arith.constant 0 : index
    %c0_40 = arith.constant 0 : index
    %64 = vector.load %arg8[%c0_39, %c0_40] : memref<36x256xf32, #tpu.memory_space<vmem>>, vector<4x256xf32>
    tpu.vector_store %arg8[%c0_39, %c0_40], %63 {strides = array<i32>} : memref<36x256xf32, #tpu.memory_space<vmem>>, vector<4x256xf32>,
    %c16_i32_41 = arith.constant 16 : i32
    %65 = tpu.dynamic_rotate %59 by %c16_i32_41 dim 1 : vector<4x256xf32>, i32 -> vector<4x256xf32>
    %c1_42 = arith.constant 1 : index
    %c0_43 = arith.constant 0 : index
    %66 = vector.load %arg2[%c1_42, %c0_43] : memref<9x256xf32, #tpu.memory_space<vmem>>, vector<1x256xf32>
    %67 = vector.broadcast %66 : vector<1x256xf32> to vector<4x256xf32>
    %68 = arith.mulf %65, %67 : vector<4x256xf32>
    %c4_44 = arith.constant 4 : index
    %c0_45 = arith.constant 0 : index
    %69 = vector.load %arg8[%c4_44, %c0_45] : memref<36x256xf32, #tpu.memory_space<vmem>>, vector<4x256xf32>
    tpu.vector_store %arg8[%c4_44, %c0_45], %68 {strides = array<i32>} : memref<36x256xf32, #tpu.memory_space<vmem>>, vector<4x256xf32>,
    %c15_i32_46 = arith.constant 15 : i32
    %70 = tpu.dynamic_rotate %59 by %c15_i32_46 dim 1 : vector<4x256xf32>, i32 -> vector<4x256xf32>
    %c2_47 = arith.constant 2 : index
    %c0_48 = arith.constant 0 : index
    %71 = vector.load %arg2[%c2_47, %c0_48] : memref<9x256xf32, #tpu.memory_space<vmem>>, vector<1x256xf32>
    %72 = vector.broadcast %71 : vector<1x256xf32> to vector<4x256xf32>
    %73 = arith.mulf %70, %72 : vector<4x256xf32>
    %c8_49 = arith.constant 8 : index
    %c0_50 = arith.constant 0 : index
    %74 = vector.load %arg8[%c8_49, %c0_50] : memref<36x256xf32, #tpu.memory_space<vmem>>, vector<4x256xf32>
    tpu.vector_store %arg8[%c8_49, %c0_50], %73 {strides = array<i32>} : memref<36x256xf32, #tpu.memory_space<vmem>>, vector<4x256xf32>,
    %c1_i32_51 = arith.constant 1 : i32
    %75 = tpu.dynamic_rotate %59 by %c1_i32_51 dim 1 : vector<4x256xf32>, i32 -> vector<4x256xf32>
    %c3_52 = arith.constant 3 : index
    %c0_53 = arith.constant 0 : index
    %76 = vector.load %arg2[%c3_52, %c0_53] : memref<9x256xf32, #tpu.memory_space<vmem>>, vector<1x256xf32>
    %77 = vector.broadcast %76 : vector<1x256xf32> to vector<4x256xf32>
    %78 = arith.mulf %75, %77 : vector<4x256xf32>
    %c12_54 = arith.constant 12 : index
    %c0_55 = arith.constant 0 : index
    %79 = vector.load %arg8[%c12_54, %c0_55] : memref<36x256xf32, #tpu.memory_space<vmem>>, vector<4x256xf32>
    tpu.vector_store %arg8[%c12_54, %c0_55], %78 {strides = array<i32>} : memref<36x256xf32, #tpu.memory_space<vmem>>, vector<4x256xf32>,
    %c4_56 = arith.constant 4 : index
    %c0_57 = arith.constant 0 : index
    %80 = vector.load %arg2[%c4_56, %c0_57] : memref<9x256xf32, #tpu.memory_space<vmem>>, vector<1x256xf32>
    %81 = vector.broadcast %80 : vector<1x256xf32> to vector<4x256xf32>
    %82 = arith.mulf %59, %81 : vector<4x256xf32>
    %c16_58 = arith.constant 16 : index
    %c0_59 = arith.constant 0 : index
    %83 = vector.load %arg8[%c16_58, %c0_59] : memref<36x256xf32, #tpu.memory_space<vmem>>, vector<4x256xf32>
    tpu.vector_store %arg8[%c16_58, %c0_59], %82 {strides = array<i32>} : memref<36x256xf32, #tpu.memory_space<vmem>>, vector<4x256xf32>,
    %c255_i32_60 = arith.constant 255 : i32
    %84 = tpu.dynamic_rotate %59 by %c255_i32_60 dim 1 : vector<4x256xf32>, i32 -> vector<4x256xf32>
    %c5_61 = arith.constant 5 : index
    %c0_62 = arith.constant 0 : index
    %85 = vector.load %arg2[%c5_61, %c0_62] : memref<9x256xf32, #tpu.memory_space<vmem>>, vector<1x256xf32>
    %86 = vector.broadcast %85 : vector<1x256xf32> to vector<4x256xf32>
    %87 = arith.mulf %84, %86 : vector<4x256xf32>
    %c20_63 = arith.constant 20 : index
    %c0_64 = arith.constant 0 : index
    %88 = vector.load %arg8[%c20_63, %c0_64] : memref<36x256xf32, #tpu.memory_space<vmem>>, vector<4x256xf32>
    tpu.vector_store %arg8[%c20_63, %c0_64], %87 {strides = array<i32>} : memref<36x256xf32, #tpu.memory_space<vmem>>, vector<4x256xf32>,
    %c241_i32_65 = arith.constant 241 : i32
    %89 = tpu.dynamic_rotate %59 by %c241_i32_65 dim 1 : vector<4x256xf32>, i32 -> vector<4x256xf32>
    %c6_66 = arith.constant 6 : index
    %c0_67 = arith.constant 0 : index
    %90 = vector.load %arg2[%c6_66, %c0_67] : memref<9x256xf32, #tpu.memory_space<vmem>>, vector<1x256xf32>
    %91 = vector.broadcast %90 : vector<1x256xf32> to vector<4x256xf32>
    %92 = arith.mulf %89, %91 : vector<4x256xf32>
    %c24_68 = arith.constant 24 : index
    %c0_69 = arith.constant 0 : index
    %93 = vector.load %arg8[%c24_68, %c0_69] : memref<36x256xf32, #tpu.memory_space<vmem>>, vector<4x256xf32>
    tpu.vector_store %arg8[%c24_68, %c0_69], %92 {strides = array<i32>} : memref<36x256xf32, #tpu.memory_space<vmem>>, vector<4x256xf32>,
    %c240_i32_70 = arith.constant 240 : i32
    %94 = tpu.dynamic_rotate %59 by %c240_i32_70 dim 1 : vector<4x256xf32>, i32 -> vector<4x256xf32>
    %c7_71 = arith.constant 7 : index
    %c0_72 = arith.constant 0 : index
    %95 = vector.load %arg2[%c7_71, %c0_72] : memref<9x256xf32, #tpu.memory_space<vmem>>, vector<1x256xf32>
    %96 = vector.broadcast %95 : vector<1x256xf32> to vector<4x256xf32>
    %97 = arith.mulf %94, %96 : vector<4x256xf32>
    %c28_73 = arith.constant 28 : index
    %c0_74 = arith.constant 0 : index
    %98 = vector.load %arg8[%c28_73, %c0_74] : memref<36x256xf32, #tpu.memory_space<vmem>>, vector<4x256xf32>
    tpu.vector_store %arg8[%c28_73, %c0_74], %97 {strides = array<i32>} : memref<36x256xf32, #tpu.memory_space<vmem>>, vector<4x256xf32>,
    %c239_i32_75 = arith.constant 239 : i32
    %99 = tpu.dynamic_rotate %59 by %c239_i32_75 dim 1 : vector<4x256xf32>, i32 -> vector<4x256xf32>
    %c8_76 = arith.constant 8 : index
    %c0_77 = arith.constant 0 : index
    %100 = vector.load %arg2[%c8_76, %c0_77] : memref<9x256xf32, #tpu.memory_space<vmem>>, vector<1x256xf32>
    %101 = vector.broadcast %100 : vector<1x256xf32> to vector<4x256xf32>
    %102 = arith.mulf %99, %101 : vector<4x256xf32>
    %c32_78 = arith.constant 32 : index
    %c0_79 = arith.constant 0 : index
    %103 = vector.load %arg8[%c32_78, %c0_79] : memref<36x256xf32, #tpu.memory_space<vmem>>, vector<4x256xf32>
    tpu.vector_store %arg8[%c32_78, %c0_79], %102 {strides = array<i32>} : memref<36x256xf32, #tpu.memory_space<vmem>>, vector<4x256xf32>,
    %c0_80 = arith.constant 0 : index
    %c0_81 = arith.constant 0 : index
    %104 = vector.load %arg8[%c0_80, %c0_81] : memref<36x256xf32, #tpu.memory_space<vmem>>, vector<36x256xf32>
    %105 = arith.truncf %104 : vector<36x256xf32> to vector<36x256xbf16>
    %cst_82 = arith.constant dense<0.000000e+00> : vector<4x256xf32>
    %106 = tpu.matmul %1, %105, %cst_82 {dimension_numbers = #tpu.dot_dimension_numbers<[1], [0], [0], [1], [0, 0, 1, 1], [], []>} : vector<4x36xbf16>, vector<36x256xbf16>, vector<4x256xf32> -> vector<4x256xf32>
    %107 = vector.broadcast %3 : vector<4x1xf32> to vector<4x256xf32>
    %108 = arith.addf %106, %107 : vector<4x256xf32>
    %109 = arith.addf %108, %5 : vector<4x256xf32>
    %cst_83 = arith.constant 0.000000e+00 : f32
    %110 = vector.broadcast %cst_83 : f32 to vector<4x256xf32>
    %111 = arith.cmpf ogt, %109, %110 : vector<4x256xf32>
    %cst_84 = arith.constant 0.00999999977 : f32
    %112 = vector.broadcast %cst_84 : f32 to vector<4x256xf32>
    %113 = arith.mulf %112, %109 : vector<4x256xf32>
    %114 = arith.select %111, %109, %113 : vector<4x256xi1>, vector<4x256xf32>
    %c0_85 = arith.constant 0 : index
    %c0_86 = arith.constant 0 : index
    %c0_87 = arith.constant 0 : index
    %115 = vector.load %arg7[%c0_85, %c0_86, %c0_87] : memref<1x4x256xf32, #tpu.memory_space<vmem>>, vector<1x4x256xf32>
    %116 = vector.shape_cast %115 : vector<1x4x256xf32> to vector<4x256xf32>
    %117 = vector.shape_cast %114 : vector<4x256xf32> to vector<1x4x256xf32>
    tpu.vector_store %arg7[%c0_85, %c0_86, %c0_87], %117 {strides = array<i32>} : memref<1x4x256xf32, #tpu.memory_space<vmem>>, vector<1x4x256xf32>,
    return
  }
  func.func @transform_0(%arg0: i32) -> (i32, i32, i32) {
    %c0_i32 = arith.constant 0 : i32
    %c0_i32_0 = arith.constant 0 : i32
    %c0_i32_1 = arith.constant 0 : i32
    return %arg0, %c0_i32, %c0_i32_0 : i32, i32, i32
  }
  func.func @transform_1(%arg0: i32) -> (i32, i32) {
    %c0_i32 = arith.constant 0 : i32
    %c0_i32_0 = arith.constant 0 : i32
    %c0_i32_1 = arith.constant 0 : i32
    return %c0_i32, %c0_i32_0 : i32, i32
  }
  func.func @transform_2(%arg0: i32) -> (i32, i32) {
    %c0_i32 = arith.constant 0 : i32
    %c0_i32_0 = arith.constant 0 : i32
    %c0_i32_1 = arith.constant 0 : i32
    return %c0_i32, %c0_i32_0 : i32, i32
  }
  func.func @transform_3(%arg0: i32) -> (i32, i32) {
    %c0_i32 = arith.constant 0 : i32
    %c0_i32_0 = arith.constant 0 : i32
    %c0_i32_1 = arith.constant 0 : i32
    return %c0_i32, %c0_i32_0 : i32, i32
  }
  func.func @transform_4(%arg0: i32) -> (i32, i32) {
    %c0_i32 = arith.constant 0 : i32
    %c0_i32_0 = arith.constant 0 : i32
    %c0_i32_1 = arith.constant 0 : i32
    return %c0_i32, %c0_i32_0 : i32, i32
  }
  func.func @transform_5(%arg0: i32) -> (i32, i32) {
    %c0_i32 = arith.constant 0 : i32
    %c0_i32_0 = arith.constant 0 : i32
    %c0_i32_1 = arith.constant 0 : i32
    return %c0_i32, %c0_i32_0 : i32, i32
  }
  func.func @transform_6(%arg0: i32) -> (i32, i32, i32) {
    %c0_i32 = arith.constant 0 : i32
    %c0_i32_0 = arith.constant 0 : i32
    %c0_i32_1 = arith.constant 0 : i32
    return %arg0, %c0_i32, %c0_i32_0 : i32, i32, i32
  }
}

</mosaic_0001>

<bundles_post_ra>
// kernel: tpu_custom_call.1
= control target key start
LH: loop header
LB: loop body
LE: loop exit
PB: predicated region body
PF: predicated region fallthrough
CT: control target
= control target key end

     0   :  { %11 = vsyncpa [#allocation4], 0  ;;  %s1662_s0 = inlined_call_operand.hbm [shape: f32[2,4,256], index: 0, kind: input, shape index: {}]   ;;  %s1663_s1 = inlined_call_operand.hbm [shape: f32[9,256], index: 1, kind: input, shape index: {}]   ;;  %s1664_s2 = inlined_call_operand.vmem [shape: bf16[4,36], index: 2, kind: input, shape index: {}]   ;;  %s1665_s3 = inlined_call_operand.vmem [shape: bf16[4,36], index: 3, kind: input, shape index: {}]   ;;  %s1666_s4 = inlined_call_operand.vmem [shape: f32[4,1], index: 4, kind: input, shape index: {}]   ;;  %s1667_s5 = inlined_call_operand.vmem [shape: f32[4,1], index: 5, kind: input, shape index: {}]   ;;  %s1668_s6 = inlined_call_operand.hbm [shape: f32[2,4,256], index: 6, kind: output, shape index: {}]  }
   0x1   :  { %13 = vsyncpa [#allocation4 + $0x1], 0 }
   0x2   :  { %14 = vsyncpa [#allocation7], 0 }
   0x3   :  { %15 = vsyncpa [#allocation5], 0 }
   0x4   :  { %17 = vsyncpa [#allocation5 + $0x1], 0  ;;  %s1273_s21 = smov 0   ;;  %s1275_s22 = smov 0  }
   0x5   :  { %s1277_s23 = smov 0   ;;  %s1279_s24 = smov 0  }
   0x6 LB: > { %s1294_s25 = sadd.s32 4294967295, %s1222_s24   ;;  %s1002_s26 = sadd.s32 4294967294, %s1222_s24   ;;  %s1222_s24 = sphi %s1279_s24, %s1688_s24   ;;  %s1218_s23 = sphi %s1277_s23, %s1687_s23   ;;  %s1214_s22 = sphi %s1275_s22, %s1686_s22   ;;  %s1210_s21 = sphi %s1273_s21, %s1685_s21  }
   0x7   : > { %p43_p0 = scmp.ne.s32.totalorder %s1214_s22, %s1210_s21  ;;  %p1669_p1 = scmp.eq.s32.totalorder %s1294_s25, 0 }
   0x8   : > { %p178_p3 = scmp.eq.s32.totalorder %s1002_s26, 1  ;;  %p1003_p5 = scmp.ge.s32.totalorder %s1222_s24, 1 }
   0x9   : > { %p1303_p4 = por %p1669_p1, %p43_p0  ;;  %p185_p7 = scmp.lt.s32.totalorder %s1222_s24, 3 }
   0xa   : > { %p1308_p6 = por %p178_p3, %p43_p0  ;;  %s1224_s30 = smov [#allocation6]  }
   0xb   : > { %s1672_s27 = scalar_select %p1303_p4, 1, 0 }
   0xc   : > { %s1673_s28 = scalar_select %p1308_p6, 1, 0 }
   0xd   : > { %p1313_p8 = pnand %p1003_p5, %p185_p7  ;;  %s197_s7 = sshll.u32 %s1224_s30, 4  ;;  %s1317_s7 = int_to_ptr.vmem [resolvable:$true] %s197_s7 }
   0xe   : > { %s1329_s9 = sadd.s32 1, %s1222_s24   ;;  %s30_s10 = sadd.s32 1, %s1218_s23 }
   0xf   : > { %s1674_s29 = scalar_select %p1313_p8, 1, 0 }
  0x10   : > { %p1032_p9 = pneg %p1313_p8  ;;  %s27_s11 = ssub.s32 %s1222_s24, %s1329_s9 }
  0x11   : > { %s1094_s14 = scalar_lea.hbm %s1663_s1, 512 }
  0x12   : > { %p1324_p11 = pnand %p1032_p9, %p1669_p1  ;;  %p1095_p12 = scmp.ne.s32.totalorder %s1663_s1, %s1094_s14 }
  0x13   : > { %p1101_p5 = scmp.lt.u32.totalorder %s1094_s14, %s1663_s1 }
  0x14   : > { %p1096_p13 = pneg %p1324_p11 }
  0x16   : > { %p1097_p0 = pnand %p1096_p13, %p1095_p12 }
  0x18   : > { %p1098_p3 = pneg %p1097_p0 }
  0x1a   : > { %p1103_p7 = pnand %p1101_p5, %p1098_p3 }
  0x1c   : > { %1106 = shalt.err (!%p1103_p7)
}
  0x1d   : > { %s1107_s19 = scalar_lea.vmem %s1317_s7, 512  ;;  %p1115_p2 = scmp.lt.s32.totalorder %s1317_s7, %s1317_s7 }
  0x1e   : > { %p1108_p9 = scmp.ne.s32.totalorder %s1317_s7, %s1107_s19  ;;  %p1116_p6 = scmp.lt.s32.totalorder %s1107_s19, %s1107_s19 }
  0x20   : > { %p1110_p10 = pnand %p1108_p9, %p1096_p13  ;;  %p1117_p4 = por %p1116_p6, %p1115_p2 }
  0x22   : > { %p1111_p1 = pneg %p1110_p10 }
  0x24   : > { %p1118_p8 = pnand %p1117_p4, %p1111_p1 }
  0x26   : > { %1121 = shalt.err (!%p1118_p8)
}
  0x27   : > { %s1225_s20 = smov 256   ;;  %s1226_s26 = smov 16  }
  0x28   : > { %1035 = dma.hbm_to_vmem [thread:$0]  (!%p1324_p11), %s1663_s1, 512, %s1317_s7, [#allocation7], %s1225_s20, %s1225_s20, %s1226_s26  }
  0x29   : > { %p28_p2 = scmp.eq.s32.totalorder %s27_s11, 0  ;;  %p37_p1 = scmp.ne.s32.totalorder %s1218_s23, %s1214_s22 }
  0x2a   : > { %p38_p4 = scmp.eq.s32.totalorder %s1222_s24, 0  ;;  %p1045_p6 = scmp.lt.s32.totalorder %s1222_s24, 2 }
  0x2b   : > { %s1360_s13 = scalar_select %p28_p2, %s1218_s23, %s30_s10  }
  0x2c   : > { %p39_p8 = por %p38_p4, %p37_p1  ;;  %p1676_p10 = scmp.eq.s32.totalorder %s1294_s25, 1 }
  0x2d   : > { %s223_s15 = sand.u32 1, %s1218_s23   ;;  %s1022_s16 = sshll.u32 %s1222_s24, 7 }
  0x2e   : > { %p1364_p12 = por %p1676_p10, %p37_p1  ;;  %s1006_s17 = sshll.u32 %s223_s15, 3 }
  0x2f   : > { %s1373_s19 = scalar_lea.hbm %s1662_s0, %s1022_s16  ;;  %s227_s7 = scalar_lea.vmem [#allocation3], %s1006_s17 }
  0x30   : > { %s235_s10 = sshll.u32 %s227_s7, 4  ;;  %p1375_p11 = pnand %p1045_p6, %p39_p8  ;;  %s1379_s10 = int_to_ptr.vmem [resolvable:$true] %s235_s10 }
  0x31   : > { %s224_s20 = scalar_lea.sflag [#allocation4], %s223_s15  ;;  %s1122_s26 = scalar_lea.hbm %s1373_s19, 128 }
  0x32   : > { %p1123_p13 = scmp.ne.s32.totalorder %s1373_s19, %s1122_s26  ;;  %p1124_p0 = pneg %p1375_p11 }
  0x33   : > { %s1127_s16 = scalar_lea.hbm %s1662_s0, 256  ;;  %p1128_p7 = scmp.lt.u32.totalorder %s1373_s19, %s1662_s0 }
  0x34   : > { %p1125_p3 = pnand %p1124_p0, %p1123_p13  ;;  %p1129_p9 = scmp.lt.u32.totalorder %s1127_s16, %s1122_s26 }
  0x35   : > { %p1131_p1 = scmp.lt.u32.totalorder %s1122_s26, %s1373_s19 }
  0x36   : > { %p1126_p5 = pneg %p1125_p3  ;;  %p1130_p2 = por %p1129_p9, %p1128_p7 }
  0x38   : > { %p1132_p4 = por %p1131_p1, %p1130_p2 }
  0x3a   : > { %p1133_p6 = pnand %p1132_p4, %p1126_p5 }
  0x3c   : > { %1136 = shalt.err (!%p1133_p6)
}
  0x3d   : > { %s1137_s15 = scalar_lea.vmem %s1379_s10, 128  ;;  %s1227_s18 = smov [#allocation3]  }
  0x3e   : > { %p1138_p8 = scmp.ne.s32.totalorder %s1379_s10, %s1137_s15  ;;  %s1142_s7 = sshll.u32 %s1227_s18, 4  ;;  %s1143_s7 = int_to_ptr.vmem [resolvable:$false] %s1142_s7 }
  0x3f   : > { %s1144_s30 = scalar_lea.vmem %s1143_s7, 256  ;;  %p1145_p3 = scmp.lt.s32.totalorder %s1379_s10, %s1143_s7 }
  0x40   : > { %p1140_p10 = pnand %p1138_p8, %p1124_p0  ;;  %p1146_p7 = scmp.lt.s32.totalorder %s1144_s30, %s1137_s15 }
  0x42   : > { %p1141_p13 = pneg %p1140_p10  ;;  %p1147_p9 = por %p1146_p7, %p1145_p3 }
  0x44   : > { %p1148_p2 = pnand %p1147_p9, %p1141_p13 }
  0x46   : > { %1151 = shalt.err (!%p1148_p2)
}
  0x47   : > { %1039 = dma.hbm_to_vmem [thread:$0]  (!%p1375_p11), %s1373_s19, 128, %s1379_s10, %s224_s20  }
  0x48   : > { %p1679_p5 = scmp.ne.s32.totalorder %s1674_s29, 0 }
  0x49   : > { %s1409_s26 = sand.u32 (!%p1679_p5), 1, %s1214_s22   ;;  %p1680_p0 = scmp.ne.s32.totalorder (!%p1679_p5), %s1672_s27, 0 }
  0x4a   : > { %244 = sbr.rel (%p1679_p5) target bundleno = 863 (0x35f), region = 44  ;;  %s1010_s12 = sshll.u32 (!%p1679_p5), %s1409_s26, 3 }
  0x4b   : > { %s247_s16 = scalar_lea.sflag (!%p1679_p5), [#allocation4], %s1409_s26  ;;  %s250_s17 = scalar_lea.vmem (!%p1679_p5), [#allocation3], %s1010_s12 }
  0x51   : > { %1197 = dma.done.wait (%p1680_p0), %s247_s16, 128  }
  0x52   : > { %1199 = vsyncadd (%p1680_p0), %s247_s16, 4294967168  ;;  %p1681_p11 = scmp.eq.s32.totalorder %s1294_s25, 0 }
  0x54   : > { %1201 = dma.done.wait (%p1681_p11), [#allocation7], 512   ;;  %p1682_p1 = pmov %p1681_p11 }
  0x55   : > { %v296_v0 = vlaneseq  ;;  %v1423_v2 = vld [vmem:[%s250_s17] sm:$0xff]  ;;  %s1228_s29 = smov 1   ;;  %s1229_s19 = smov 16   ;;  %v402_v6 = vld [vmem:[#allocation6 + $0x4] ss:$8 sm:$0x3] }
  0x56   : > { %1203 = vsyncadd (%p1682_p1), [#allocation7], 4294966784  ;;  %371 = vrot.lane.b32.xlu1 %v1423_v2, %s1228_s29  ;;  %317 = vrot.lane.b32.xlu0 %v1423_v2, %s1229_s19  ;;  %v1431_v3 = vcombine.high %v1423_v2, %v1423_v2  ;;  %s1230_s27 = smov 17   ;;  %s1231_s10 = smov 15   ;;  %v1236_v12 = vmov 0   ;;  %vm553_vm8 = vcmask 1041408  }
  0x57   : > { %v304_v1 = vshrl.u32 %v296_v0, 7  ;;  %s1232_s11 = smov 127   ;;  %s1233_s20 = smov 112   ;;  %592 = vmatprep.mubr.bf16.mxu0 %v1236_v12  ;;  %1092 = vset.pattern.permute.xlu0 %v1236_v12  ;;  %v286_v13 = vld [vmem:[%s1666_s4] sm:$0xf]  ;;  %v1471_v14 = vand.u32 127, %v296_v0 }
  0x58   : > { %s1234_s8 = smov 113   ;;  %s1235_s15 = smov 111   ;;  %885 = vmatprep.mubr.bf16.mxu1 %v1236_v12  ;;  %v379_v15 = vld [vmem:[#allocation6 + $0x3] ss:$8 sm:$0x3]  ;;  %vm549_vm9 = vcmask 293888  }
  0x59   : > { %v1433_v4 = vsub.s32 0, %v304_v1  ;;  %v1435_v5 = vsub.s32 1, %v304_v1  ;;  %vm375_vm0 = vcmp.lt.s32.totalorder %v1471_v14, 1  ;;  %v301_v20 = vld [vmem:[#allocation6] ss:$8 sm:$0x3] }
  0x5a   : > { %292 = vrot.lane.b32.xlu0 %v1423_v2, %s1230_s27  ;;  %373 = vrot.lane.b32.xlu1 %v1431_v3, %s1228_s29  ;;  %v325_v21 = vld [vmem:[#allocation6 + $0x1] ss:$8 sm:$0x3]  ;;  %vm298_vm1 = vcmp.lt.s32.totalorder %v1471_v14, 17  ;;  %vm321_vm2 = vcmp.lt.s32.totalorder %v1471_v14, 16  ;;  %vm351_vm3 = vcmp.lt.s32.totalorder %v1471_v14, 15 }
  0x5b   : > { %v407_v7 = vrot.slane %v402_v6, %v1433_v4  ;;  %v411_v8 = vrot.slane %v402_v6, %v1435_v5  ;;  %v384_v18 = vrot.slane %v379_v15, %v1433_v4  ;;  %v388_v19 = vrot.slane %v379_v15, %v1435_v5  ;;  %v355_v28 = vld [vmem:[#allocation6 + $0x2] ss:$8 sm:$0x3]  ;;  %v428_v47 = vld [vmem:[#allocation6 + $0x5] ss:$8 sm:$0x3] }
  0x5c   : > { %v306_v26 = vrot.slane %v301_v20, %v1433_v4  ;;  %v310_v27 = vrot.slane %v301_v20, %v1435_v5  ;;  %v330_v31 = vrot.slane %v325_v21, %v1433_v4  ;;  %v334_v32 = vrot.slane %v325_v21, %v1435_v5  ;;  %v482_v58 = vld [vmem:[#allocation6 + $0x7] ss:$8 sm:$0x3]  ;;  %v512_v20 = vld [vmem:[#allocation6 + $0x10] ss:$8 sm:$0x3] }
  0x5d   : > { %v412_v9 = vcombine.low %v407_v7, %v411_v8  ;;  %v360_v37 = vrot.slane %v355_v28, %v1433_v4  ;;  %v364_v38 = vrot.slane %v355_v28, %v1435_v5  ;;  %vm424_vm4 = vcmp.lt.s32.totalorder %v1471_v14, 127  ;;  %v458_v7 = vld [vmem:[#allocation6 + $0x6] ss:$8 sm:$0x3]  ;;  %s908_s7 = scalar_lea.sflag [#allocation5], %s1409_s26 }
  0x5e   : > { %294 = vrot.lane.b32.xlu1 %v1431_v3, %s1230_s27  ;;  %319 = vrot.lane.b32.xlu0 %v1431_v3, %s1229_s19  ;;  %v433_v56 = vrot.slane %v428_v47, %v1433_v4  ;;  %v437_v57 = vrot.slane %v428_v47, %v1435_v5  ;;  %vm478_vm5 = vcmp.lt.s32.totalorder %v1471_v14, 112  ;;  %v487_v1 = vrot.slane %v482_v58, %v1433_v4 }
  0x5f   : > { %v414_v10 = vmul.f32 %v412_v9, %v1423_v2  ;;  %v491_v6 = vrot.slane %v482_v58, %v1435_v5  ;;  %vm454_vm6 = vcmp.lt.s32.totalorder %v1471_v14, 113  ;;  %vm508_vm7 = vcmp.lt.s32.totalorder %v1471_v14, 111 }
  0x61   : > { %v416_v11 = vcombine.high %v414_v10, %v414_v10  ;;  %418 = vst [vmem:[#allocation2 + $0x20] sm:$0xf] %v414_v10 }
  0x62   : > { %349 = vrot.lane.b32.xlu1 %v1431_v3, %s1231_s10  ;;  %347 = vrot.lane.b32.xlu0 %v1423_v2, %s1231_s10 }
  0x63   : > { %419 = vst [vmem:[#allocation2 + $0x28] sm:$0xf] %v416_v11 }
  0x66   : > { %422 = vrot.lane.b32.xlu1 %v1431_v3, %s1232_s11  ;;  %420 = vrot.lane.b32.xlu0 %v1423_v2, %s1232_s11 }
  0x6a   : > { %476 = vrot.lane.b32.xlu1 %v1431_v3, %s1233_s20  ;;  %474 = vrot.lane.b32.xlu0 %v1423_v2, %s1233_s20 }
  0x6e   : > { %452 = vrot.lane.b32.xlu1 %v1431_v3, %s1234_s8  ;;  %450 = vrot.lane.b32.xlu0 %v1423_v2, %s1234_s8 }
  0x72   : > { %506 = vrot.lane.b32.xlu1 %v1431_v3, %s1235_s15  ;;  %504 = vrot.lane.b32.xlu0 %v1423_v2, %s1235_s15 }
  0x76   : > { %546 = vperm.xlu0 %1092, %v286_v13  }
  0xc8   : > { %v372_v16 = vpop.permute.xlu1 %371  ;;  %v318_v17 = vpop.permute.xlu0 %317 }
  0xcc   : > { %v293_v22 = vpop.permute.xlu0 %292  ;;  %v374_v23 = vpop.permute.xlu1 %373 }
  0xcd   : > { %v376_v24 = vsel %vm375_vm0, %v372_v16, %v374_v23  ;;  %v377_v25 = vsel %vm375_vm0, %v374_v23, %v372_v16 }
  0xce   : > { %v391_v29 = vmul.f32 %v384_v18, %v377_v25  ;;  %v392_v30 = vmul.f32 %v388_v19, %v376_v24  ;;  %v467_v18 = vrot.slane %v458_v7, %v1435_v5 }
  0xd0   : > { %v395_v33 = vrot.slane %v391_v29, 4  ;;  %v396_v34 = vrot.slane %v392_v30, 4  ;;  %v295_v35 = vpop.permute.xlu1 %294  ;;  %v320_v36 = vpop.permute.xlu0 %319 }
  0xd1   : > { %v299_v39 = vsel %vm298_vm1, %v293_v22, %v295_v35  ;;  %v300_v40 = vsel %vm298_vm1, %v295_v35, %v293_v22  ;;  %v322_v41 = vsel %vm321_vm2, %v318_v17, %v320_v36  ;;  %v323_v42 = vsel %vm321_vm2, %v320_v36, %v318_v17 }
  0xd2   : > { %399 = vst [vmem:[#allocation2 + $0x10] sm:$0xf0] %v395_v33  ;;  %400 = vst [vmem:[#allocation2 + $0x18] sm:$0xf0] %v396_v34  ;;  %v313_v43 = vmul.f32 %v306_v26, %v300_v40  ;;  %v314_v44 = vmul.f32 %v310_v27, %v299_v39  ;;  %v337_v45 = vmul.f32 %v330_v31, %v323_v42 }
  0xd3   : > { %v338_v46 = vmul.f32 %v334_v32, %v322_v41  ;;  %v463_v17 = vrot.slane %v458_v7, %v1433_v4  ;;  %v517_v34 = vrot.slane %v512_v20, %v1433_v4  ;;  %v521_v35 = vrot.slane %v512_v20, %v1435_v5 }
  0xd4   : > { %315 = vst [vmem:[#allocation2] sm:$0xf] %v313_v43  ;;  %316 = vst [vmem:[#allocation2 + $0x8] sm:$0xf] %v314_v44  ;;  %v341_v48 = vrot.slane %v337_v45, 4  ;;  %v350_v50 = vpop.permute.xlu1 %349  ;;  %v348_v51 = vpop.permute.xlu0 %347 }
  0xd5   : > { %v342_v49 = vrot.slane %v338_v46, 4  ;;  %v352_v52 = vsel %vm351_vm3, %v348_v51, %v350_v50  ;;  %v353_v53 = vsel %vm351_vm3, %v350_v50, %v348_v51 }
  0xd6   : > { %345 = vst [vmem:[#allocation2] sm:$0xf0] %v341_v48  ;;  %v367_v54 = vmul.f32 %v360_v37, %v353_v53  ;;  %v368_v55 = vmul.f32 %v364_v38, %v352_v52  ;;  %v284_v53 = vld [vmem:[%s1664_s2] sm:$0x3] }
  0xd7   : > { %346 = vst [vmem:[#allocation2 + $0x8] sm:$0xf0] %v342_v49 }
  0xd8   : > { %369 = vst [vmem:[#allocation2 + $0x10] sm:$0xf] %v367_v54  ;;  %370 = vst [vmem:[#allocation2 + $0x18] sm:$0xf] %v368_v55  ;;  %v423_v59 = vpop.permute.xlu1 %422  ;;  %v421_v60 = vpop.permute.xlu0 %420 }
  0xd9   : > { %v425_v61 = vsel %vm424_vm4, %v421_v60, %v423_v59  ;;  %v426_v62 = vsel %vm424_vm4, %v423_v59, %v421_v60  ;;  %v707_v55 = vld [vmem:[#allocation6 + $0x4] ss:$8 sm:$0x3] }
  0xda   : > { %v440_v63 = vmul.f32 %v433_v56, %v425_v61  ;;  %v441_v0 = vmul.f32 %v437_v57, %v426_v62  ;;  %v712_v59 = vrot.slane %v707_v55, %v1433_v4 }
  0xdc   : > { %v444_v8 = vrot.slane %v440_v63, 4  ;;  %v445_v9 = vrot.slane %v441_v0, 4  ;;  %v477_v10 = vpop.permute.xlu1 %476  ;;  %v475_v11 = vpop.permute.xlu0 %474  ;;  %v716_v63 = vrot.slane %v707_v55, %v1435_v5 }
  0xdd   : > { %v479_v12 = vsel %vm478_vm5, %v475_v11, %v477_v10  ;;  %v480_v13 = vsel %vm478_vm5, %v477_v10, %v475_v11  ;;  %v528_v22 = vld [vmem:[#allocation2] sm:$0xff] }
  0xde   : > { %448 = vst [vmem:[#allocation2 + $0x20] sm:$0xf0] %v444_v8  ;;  %449 = vst [vmem:[#allocation2 + $0x28] sm:$0xf0] %v445_v9  ;;  %v494_v15 = vmul.f32 %v487_v1, %v479_v12  ;;  %v495_v16 = vmul.f32 %v491_v6, %v480_v13  ;;  %v529_v19 = vld [vmem:[#allocation2 + $0x8] sm:$0xff] }
  0xdf   : > { %v531_v21 = vld [vmem:[#allocation2 + $0x18] sm:$0xff]  ;;  %v530_v23 = vld [vmem:[#allocation2 + $0x10] sm:$0xff]  ;;  %v287_v10 = vld [vmem:[%s1667_s5] sm:$0xf] }
  0xe0   : > { %v498_v24 = vrot.slane %v494_v15, 4  ;;  %v499_v25 = vrot.slane %v495_v16, 4  ;;  %v453_v26 = vpop.permute.xlu1 %452  ;;  %v451_v27 = vpop.permute.xlu0 %450  ;;  %v539_v28 = vpack.c.bf16 %v531_v21, %v529_v19  ;;  %v538_v29 = vpack.c.bf16 %v530_v23, %v528_v22  ;;  %v635_v11 = vld [vmem:[#allocation6 + $0x1] ss:$8 sm:$0x3] }
  0xe1   : > { %v455_v30 = vsel %vm454_vm6, %v451_v27, %v453_v26  ;;  %v456_v31 = vsel %vm454_vm6, %v453_v26, %v451_v27  ;;  %v640_v15 = vrot.slane %v635_v11, %v1433_v4  ;;  %v644_v16 = vrot.slane %v635_v11, %v1435_v5  ;;  %v613_v26 = vld [vmem:[#allocation6] ss:$8 sm:$0x3] }
  0xe2   : > { %502 = vst [vmem:[#allocation2 + $0x30] sm:$0xf0] %v498_v24  ;;  %503 = vst [vmem:[#allocation2 + $0x38] sm:$0xf0] %v499_v25  ;;  %v470_v32 = vmul.f32 %v463_v17, %v455_v30  ;;  %v471_v33 = vmul.f32 %v467_v18, %v456_v31  ;;  %560 = vmatprep.subr.bf16.mxu0 %v539_v28 }
  0xe3   : > { %561 = vmatpush1.bf16.msra.mxu0 %v538_v29  ;;  %v685_v17 = vld [vmem:[#allocation6 + $0x3] ss:$8 sm:$0x3] }
  0xe4   : > { %472 = vst [vmem:[#allocation2 + $0x30] sm:$0xf] %v470_v32  ;;  %473 = vst [vmem:[#allocation2 + $0x38] sm:$0xf] %v471_v33  ;;  %v507_v36 = vpop.permute.xlu1 %506  ;;  %v505_v37 = vpop.permute.xlu0 %504  ;;  %v690_v24 = vrot.slane %v685_v17, %v1433_v4  ;;  %v694_v25 = vrot.slane %v685_v17, %v1435_v5 }
  0xe5   : > { %v509_v38 = vsel %vm508_vm7, %v505_v37, %v507_v36  ;;  %v510_v39 = vsel %vm508_vm7, %v507_v36, %v505_v37  ;;  %v533_v42 = vld [vmem:[#allocation2 + $0x28] sm:$0xff]  ;;  %v532_v44 = vld [vmem:[#allocation2 + $0x20] sm:$0xff]  ;;  %v622_v36 = vrot.slane %v613_v26, %v1435_v5 }
  0xe6   : > { %v524_v40 = vmul.f32 %v517_v34, %v509_v38  ;;  %v525_v41 = vmul.f32 %v521_v35, %v510_v39  ;;  %v618_v35 = vrot.slane %v613_v26, %v1433_v4  ;;  %v663_v37 = vld [vmem:[#allocation6 + $0x2] ss:$8 sm:$0x3] }
  0xe8   : > { %526 = vst [vmem:[#allocation2 + $0x40] sm:$0xf] %v524_v40  ;;  %527 = vst [vmem:[#allocation2 + $0x48] sm:$0xf] %v525_v41 }
  0xeb   : > { %v535_v43 = vld [vmem:[#allocation2 + $0x38] sm:$0xff]  ;;  %v534_v45 = vld [vmem:[#allocation2 + $0x30] sm:$0xff] }
  0xec   : > { %v541_v46 = vpack.c.bf16 %v535_v43, %v533_v42  ;;  %v540_v47 = vpack.c.bf16 %v534_v45, %v532_v44 }
  0xee   : > { %562 = vmatprep.subr.bf16.mxu0 %v541_v46  ;;  %v668_v46 = vrot.slane %v663_v37, %v1433_v4 }
  0xef   : > { %563 = vmatpush1.bf16.msra.mxu0 %v540_v47  ;;  %v537_v48 = vld [vmem:[#allocation2 + $0x48] sm:$0xf]  ;;  %v536_v49 = vld [vmem:[#allocation2 + $0x40] sm:$0xf]  ;;  %v672_v47 = vrot.slane %v663_v37, %v1435_v5 }
  0xf0   : > { %v543_v50 = vpack.c.bf16 %v537_v48, %v537_v48  ;;  %v542_v51 = vpack.c.bf16 %v536_v49, %v536_v49  ;;  %v729_v48 = vld [vmem:[#allocation6 + $0x5] ss:$8 sm:$0x3] }
  0xf1   : > { %v738_v55 = vrot.slane %v729_v48, %v1435_v5 }
  0xf2   : > { %1013 = vmatprep.subr.msk.bf16.mxu0 %vm553_vm8, %v543_v50  ;;  %v555_v52 = vsel %vm553_vm8, %v542_v51, 0 }
  0xf3   : > { %565 = vmatpush1.bf16.msra.mxu0 %v555_v52 }
  0xf5   : > { %v547_v54 = vpop.permute.xlu0 %546 }
  0xf6   : > { %1014 = vmatmul.mubr.msk.bf16.vlgmr.msra.gmra.mrb[0].mxu0 %vm549_vm9, %v284_v53 }
 0x1c9   : > { %v594_v56 = vpop.f32.mrb[0].mxu0 }
 0x1ca   : > { %v595_v57 = vadd.f32 %v594_v56, %v547_v54  ;;  %v596_v58 = vpop.f32.mrb[1].mxu0  ;;  %v779_v56 = vld [vmem:[#allocation6 + $0x7] ss:$8 sm:$0x3] }
 0x1cb   : > { %v597_v60 = vadd.f32 %v596_v58, %v547_v54  ;;  %v598_v61 = vpop.f32.mrb[2].mxu0  ;;  %v734_v54 = vrot.slane %v729_v48, %v1433_v4 }
 0x1cc   : > { %vm601_vm10 = vcmp.gt.f32.partialorder %v595_v57, 0.0  ;;  %v603_v62 = vmul.f32 0.01, %v595_v57  ;;  %v599_v0 = vpop.f32.mrb[3].mxu0 }
 0x1cd   : > { %vm602_vm11 = vcmp.gt.f32.partialorder %v597_v60, 0.0  ;;  %v604_v1 = vmul.f32 0.01, %v597_v60  ;;  %v788_v0 = vrot.slane %v779_v56, %v1435_v5 }
 0x1ce   : > { %v605_v6 = vsel %vm601_vm10, %v595_v57, %v603_v62 }
 0x1cf   : > { %v719_v7 = vmul.f32 %v712_v59, %v605_v6  ;;  %v606_v8 = vsel %vm602_vm11, %v597_v60, %v604_v1  ;;  %679 = vrot.lane.b32.xlu0 %v605_v6, %s1228_s29  ;;  %629 = vrot.lane.b32.xlu1 %v605_v6, %s1229_s19  ;;  %v757_v1 = vld [vmem:[#allocation6 + $0x6] ss:$8 sm:$0x3] }
 0x1d0   : > { %v720_v9 = vmul.f32 %v716_v63, %v606_v8  ;;  %v784_v63 = vrot.slane %v779_v56, %v1433_v4 }
 0x1d1   : > { %721 = vst [vmem:[#allocation2 + $0x20] sm:$0xf] %v719_v7 }
 0x1d2   : > { %722 = vst [vmem:[#allocation2 + $0x28] sm:$0xf] %v720_v9 }
 0x1d3   : > { %607 = vrot.lane.b32.xlu0 %v605_v6, %s1230_s27  ;;  %631 = vrot.lane.b32.xlu1 %v606_v8, %s1229_s19 }
 0x1d7   : > { %657 = vrot.lane.b32.xlu0 %v605_v6, %s1231_s10  ;;  %681 = vrot.lane.b32.xlu1 %v606_v8, %s1228_s29 }
 0x1db   : > { %723 = vrot.lane.b32.xlu0 %v605_v6, %s1232_s11  ;;  %609 = vrot.lane.b32.xlu1 %v606_v8, %s1230_s27 }
 0x1df   : > { %773 = vrot.lane.b32.xlu0 %v605_v6, %s1233_s20  ;;  %659 = vrot.lane.b32.xlu1 %v606_v8, %s1231_s10  ;;  %s1023_s10 = sshll.u32 %s1294_s25, 7  ;;  %s1237_s25 = smov [#allocation8]  }
 0x1e0   : > { %s1618_s18 = scalar_lea.hbm %s1668_s6, %s1023_s10 }
 0x1e3   : > { %751 = vrot.lane.b32.xlu0 %v605_v6, %s1234_s8  ;;  %725 = vrot.lane.b32.xlu1 %v606_v8, %s1232_s11  ;;  %s282_s11 = scalar_lea.vmem [#allocation8], %s1010_s12  ;;  %s1156_s12 = sshll.u32 %s1237_s25, 4  ;;  %s1157_s12 = int_to_ptr.vmem [resolvable:$false] %s1156_s12 }
 0x1e4   : > { %s1158_s16 = scalar_lea.vmem %s1157_s12, 256 }
 0x1e7   : > { %801 = vrot.lane.b32.xlu0 %v605_v6, %s1235_s15  ;;  %775 = vrot.lane.b32.xlu1 %v606_v8, %s1233_s20  ;;  %s922_s20 = sshll.u32 %s282_s11, 4  ;;  %s1620_s20 = int_to_ptr.vmem [resolvable:$true] %s922_s20 }
 0x1e8   : > { %s1152_s30 = scalar_lea.vmem %s1620_s20, 128  ;;  %p1159_p10 = scmp.lt.s32.totalorder %s1620_s20, %s1157_s12 }
 0x1e9   : > { %p1153_p4 = scmp.ne.s32.totalorder %s1620_s20, %s1152_s30  ;;  %p1160_p13 = scmp.lt.s32.totalorder %s1158_s16, %s1152_s30 }
 0x1eb   : > { %841 = vperm.xlu0 %1092, %v287_v10   ;;  %753 = vrot.lane.b32.xlu1 %v606_v8, %s1234_s8  ;;  %p1154_p6 = pnand %p1153_p4, %p1364_p12  ;;  %p1161_p3 = por %p1160_p13, %p1159_p10 }
 0x1ed   : > { %p1155_p8 = pneg %p1154_p6 }
 0x1ef   : > { %803 = vrot.lane.b32.xlu1 %v606_v8, %s1235_s15  ;;  %p1162_p7 = pnand %p1161_p3, %p1155_p8 }
 0x241   : > { %v680_v12 = vpop.permute.xlu0 %679  ;;  %v630_v13 = vpop.permute.xlu1 %629 }
 0x245   : > { %v608_v18 = vpop.permute.xlu0 %607  ;;  %v632_v19 = vpop.permute.xlu1 %631 }
 0x246   : > { %v633_v20 = vsel %vm321_vm2, %v630_v13, %v632_v19  ;;  %v634_v21 = vsel %vm321_vm2, %v632_v19, %v630_v13 }
 0x247   : > { %v647_v22 = vmul.f32 %v640_v15, %v634_v21  ;;  %v648_v23 = vmul.f32 %v644_v16, %v633_v20  ;;  %v762_v15 = vrot.slane %v757_v1, %v1433_v4  ;;  %v766_v16 = vrot.slane %v757_v1, %v1435_v5 }
 0x249   : > { %v651_v27 = vrot.slane %v647_v22, 4  ;;  %v652_v28 = vrot.slane %v648_v23, 4  ;;  %v658_v29 = vpop.permute.xlu0 %657  ;;  %v682_v30 = vpop.permute.xlu1 %681 }
 0x24a   : > { %v683_v31 = vsel %vm375_vm0, %v680_v12, %v682_v30  ;;  %v684_v32 = vsel %vm375_vm0, %v682_v30, %v680_v12 }
 0x24b   : > { %655 = vst [vmem:[#allocation2] sm:$0xf0] %v651_v27  ;;  %656 = vst [vmem:[#allocation2 + $0x8] sm:$0xf0] %v652_v28  ;;  %v697_v33 = vmul.f32 %v690_v24, %v684_v32  ;;  %v698_v34 = vmul.f32 %v694_v25, %v683_v31 }
 0x24d   : > { %v701_v38 = vrot.slane %v697_v33, 4  ;;  %v702_v39 = vrot.slane %v698_v34, 4  ;;  %v610_v40 = vpop.permute.xlu1 %609  ;;  %v724_v43 = vpop.permute.xlu0 %723 }
 0x24e   : > { %v611_v41 = vsel %vm298_vm1, %v608_v18, %v610_v40  ;;  %v612_v42 = vsel %vm298_vm1, %v610_v40, %v608_v18  ;;  %v807_v18 = vld [vmem:[#allocation6 + $0x10] ss:$8 sm:$0x3] }
 0x24f   : > { %705 = vst [vmem:[#allocation2 + $0x10] sm:$0xf0] %v701_v38  ;;  %706 = vst [vmem:[#allocation2 + $0x18] sm:$0xf0] %v702_v39  ;;  %v625_v44 = vmul.f32 %v618_v35, %v612_v42  ;;  %v626_v45 = vmul.f32 %v622_v36, %v611_v41  ;;  %v812_v31 = vrot.slane %v807_v18, %v1433_v4 }
 0x250   : > { %v816_v32 = vrot.slane %v807_v18, %v1435_v5 }
 0x251   : > { %627 = vst [vmem:[#allocation2] sm:$0xf] %v625_v44  ;;  %628 = vst [vmem:[#allocation2 + $0x8] sm:$0xf] %v626_v45  ;;  %v660_v49 = vpop.permute.xlu1 %659  ;;  %v774_v57 = vpop.permute.xlu0 %773 }
 0x252   : > { %v661_v50 = vsel %vm351_vm3, %v658_v29, %v660_v49  ;;  %v662_v51 = vsel %vm351_vm3, %v660_v49, %v658_v29 }
 0x253   : > { %v675_v52 = vmul.f32 %v668_v46, %v662_v51  ;;  %v676_v53 = vmul.f32 %v672_v47, %v661_v50  ;;  %v285_v47 = vld [vmem:[%s1665_s3] sm:$0x3] }
 0x255   : > { %677 = vst [vmem:[#allocation2 + $0x10] sm:$0xf] %v675_v52  ;;  %678 = vst [vmem:[#allocation2 + $0x18] sm:$0xf] %v676_v53  ;;  %v726_v58 = vpop.permute.xlu1 %725  ;;  %v752_v11 = vpop.permute.xlu0 %751 }
 0x256   : > { %v727_v59 = vsel %vm424_vm4, %v724_v43, %v726_v58  ;;  %v728_v60 = vsel %vm424_vm4, %v726_v58, %v724_v43 }
 0x257   : > { %v741_v61 = vmul.f32 %v734_v54, %v727_v59  ;;  %v742_v62 = vmul.f32 %v738_v55, %v728_v60 }
 0x258   : > { %v824_v17 = vld [vmem:[#allocation2 + $0x8] sm:$0xff]  ;;  %v823_v20 = vld [vmem:[#allocation2] sm:$0xff] }
 0x259   : > { %v745_v6 = vrot.slane %v741_v61, 4  ;;  %v746_v7 = vrot.slane %v742_v62, 4  ;;  %v776_v8 = vpop.permute.xlu1 %775  ;;  %v802_v33 = vpop.permute.xlu0 %801 }
 0x25a   : > { %v777_v9 = vsel %vm478_vm5, %v774_v57, %v776_v8  ;;  %v778_v10 = vsel %vm478_vm5, %v776_v8, %v774_v57 }
 0x25b   : > { %749 = vst [vmem:[#allocation2 + $0x20] sm:$0xf0] %v745_v6  ;;  %750 = vst [vmem:[#allocation2 + $0x28] sm:$0xf0] %v746_v7  ;;  %v791_v12 = vmul.f32 %v784_v63, %v777_v9  ;;  %v792_v13 = vmul.f32 %v788_v0, %v778_v10 }
 0x25c   : > { %v826_v19 = vld [vmem:[#allocation2 + $0x18] sm:$0xff]  ;;  %v825_v21 = vld [vmem:[#allocation2 + $0x10] sm:$0xff] }
 0x25d   : > { %v795_v22 = vrot.slane %v791_v12, 4  ;;  %v796_v23 = vrot.slane %v792_v13, 4  ;;  %v754_v24 = vpop.permute.xlu1 %753  ;;  %v834_v25 = vpack.c.bf16 %v826_v19, %v824_v17  ;;  %v833_v26 = vpack.c.bf16 %v825_v21, %v823_v20 }
 0x25e   : > { %v755_v27 = vsel %vm454_vm6, %v752_v11, %v754_v24  ;;  %v756_v28 = vsel %vm454_vm6, %v754_v24, %v752_v11 }
 0x25f   : > { %799 = vst [vmem:[#allocation2 + $0x30] sm:$0xf0] %v795_v22  ;;  %800 = vst [vmem:[#allocation2 + $0x38] sm:$0xf0] %v796_v23  ;;  %v769_v29 = vmul.f32 %v762_v15, %v755_v27  ;;  %v770_v30 = vmul.f32 %v766_v16, %v756_v28  ;;  %853 = vmatprep.subr.bf16.mxu1 %v834_v25 }
 0x260   : > { %854 = vmatpush1.bf16.msra.mxu1 %v833_v26 }
 0x261   : > { %771 = vst [vmem:[#allocation2 + $0x30] sm:$0xf] %v769_v29  ;;  %772 = vst [vmem:[#allocation2 + $0x38] sm:$0xf] %v770_v30  ;;  %v804_v34 = vpop.permute.xlu1 %803 }
 0x262   : > { %v805_v35 = vsel %vm508_vm7, %v802_v33, %v804_v34  ;;  %v806_v36 = vsel %vm508_vm7, %v804_v34, %v802_v33  ;;  %v828_v39 = vld [vmem:[#allocation2 + $0x28] sm:$0xff]  ;;  %v827_v4 = vld [vmem:[#allocation2 + $0x20] sm:$0xff] }
 0x263   : > { %v819_v37 = vmul.f32 %v812_v31, %v805_v35  ;;  %v820_v38 = vmul.f32 %v816_v32, %v806_v36 }
 0x265   : > { %821 = vst [vmem:[#allocation2 + $0x40] sm:$0xf] %v819_v37  ;;  %822 = vst [vmem:[#allocation2 + $0x48] sm:$0xf] %v820_v38 }
 0x268   : > { %v830_v40 = vld [vmem:[#allocation2 + $0x38] sm:$0xff]  ;;  %v829_v41 = vld [vmem:[#allocation2 + $0x30] sm:$0xff] }
 0x269   : > { %v836_v5 = vpack.c.bf16 %v830_v40, %v828_v39  ;;  %v835_v42 = vpack.c.bf16 %v829_v41, %v827_v4 }
 0x26a   : > { %v842_v48 = vpop.permute.xlu0 %841 }
 0x26b   : > { %855 = vmatprep.subr.bf16.mxu1 %v836_v5 }
 0x26c   : > { %856 = vmatpush1.bf16.msra.mxu1 %v835_v42  ;;  %v832_v43 = vld [vmem:[#allocation2 + $0x48] sm:$0xf]  ;;  %v831_v44 = vld [vmem:[#allocation2 + $0x40] sm:$0xf] }
 0x26d   : > { %v838_v45 = vpack.c.bf16 %v832_v43, %v832_v43  ;;  %v837_v46 = vpack.c.bf16 %v831_v44, %v831_v44 }
 0x26f   : > { %1015 = vmatprep.subr.msk.bf16.mxu1 %vm553_vm8, %v838_v45  ;;  %v848_v14 = vsel %vm553_vm8, %v837_v46, 0 }
 0x270   : > { %858 = vmatpush1.bf16.msra.mxu1 %v848_v14 }
 0x273   : > { %1016 = vmatmul.mubr.msk.bf16.vlgmr.msra.gmra.mrb[0].mxu1 %vm549_vm9, %v285_v47 }
 0x346   : > { %v887_v49 = vpop.f32.mrb[0].mxu1 }
 0x347   : > { %v888_v50 = vadd.f32 %v887_v49, %v842_v48  ;;  %v889_v51 = vpop.f32.mrb[1].mxu1 }
 0x348   : > { %v890_v52 = vadd.f32 %v889_v51, %v842_v48  ;;  %v891_v53 = vpop.f32.mrb[2].mxu1 }
 0x349   : > { %v894_v54 = vadd.f32 %v888_v50, %v1423_v2  ;;  %v892_v55 = vpop.f32.mrb[3].mxu1 }
 0x34a   : > { %v895_v56 = vadd.f32 %v890_v52, %v1431_v3 }
 0x34b   : > { %vm896_vm12 = vcmp.gt.f32.partialorder %v894_v54, 0.0  ;;  %v898_v57 = vmul.f32 0.01, %v894_v54 }
 0x34c   : > { %vm897_vm13 = vcmp.gt.f32.partialorder %v895_v56, 0.0  ;;  %v899_v58 = vmul.f32 0.01, %v895_v56 }
 0x34d   : > { %v900_v59 = vsel %vm896_vm12, %v894_v54, %v898_v57 }
 0x34e   : > { %v901_v60 = vsel %vm897_vm13, %v895_v56, %v899_v58 }
 0x34f   : > { %v904_v61 = vcombine.low %v900_v59, %v901_v60 }
 0x351   : > { %906 = vst [vmem:[%s282_s11] sm:$0xff] %v904_v61 }
 0x352   : > { %1165 = shalt.err (!%p1162_p7)
}
 0x353   : > { %s1166_s26 = scalar_lea.hbm %s1618_s18, 128  ;;  %s1170_s29 = scalar_lea.hbm %s1668_s6, 256 }
 0x354   : > { %p1167_p9 = scmp.ne.s32.totalorder %s1618_s18, %s1166_s26  ;;  %p1171_p0 = scmp.lt.u32.totalorder %s1618_s18, %s1668_s6 }
 0x355   : > { %p1172_p11 = scmp.lt.u32.totalorder %s1170_s29, %s1166_s26  ;;  %p1174_p4 = scmp.lt.u32.totalorder %s1166_s26, %s1618_s18 }
 0x356   : > { %p1168_p2 = pnand %p1167_p9, %p1364_p12 }
 0x357   : > { %p1173_p1 = por %p1172_p11, %p1171_p0 }
 0x358   : > { %p1169_p5 = pneg %p1168_p2 }
 0x359   : > { %p1175_p6 = por %p1174_p4, %p1173_p1 }
 0x35b   : > { %p1176_p8 = pnand %p1175_p6, %p1169_p5 }
 0x35d   : > { %1179 = shalt.err (!%p1176_p8)
}
 0x35e   : > { %1030 = dma.vmem_to_hbm [thread:$0]  (%p1364_p12), %s1620_s20, 128, %s1618_s18, %s908_s7  }
 0x35f PF: > { %s934_s11 = sand.u32 1, %s1210_s21   ;;  %p1683_p10 = scmp.ne.s32.totalorder %s1673_s28, 0 }
 0x360   : > { %p1684_p13 = scmp.ge.s32.totalorder %s1222_s24, 2  ;;  %s935_s8 = scalar_lea.sflag [#allocation5], %s934_s11 }
 0x362   : > { %p1041_p3 = pnand %p1684_p13, %p1683_p10 }
 0x364   : > { %1205 = dma.done.wait (!%p1041_p3), %s935_s8, 128  }
 0x365   : > { %1207 = vsyncadd (!%p1041_p3), %s935_s8, 4294967168  ;;  %p20_p7 = scmp.ge.s32.totalorder %s1329_s9, 4   ;;  %s1685_s21 = smov %s1214_s22 }
 0x366   : > { %s1686_s22 = smov %s1218_s23  ;;  %s1687_s23 = smov %s1360_s13 }
 0x367   : > { %s1688_s24 = smov %s1329_s9  ;;  %22 = sbr.rel (!%p20_p7) target bundleno = 6 (0x6), region = 101 }
 0x36e   :  { %940 = vsyncpa [#allocation4], 1 }
 0x36f   :  { %942 = vsyncpa [#allocation4 + $0x1], 1 }
 0x370   :  { %943 = vsyncpa [#allocation7], 1 }
 0x371   :  { %944 = vsyncpa [#allocation5], 1 }
 0x372   :  { %946 = vsyncpa [#allocation5 + $0x1], 1 }

</bundles_post_ra>
